<compile_context>
chip_gen: v7x
topology: tpu7x:2x2x1
jax: 0.10.0
libtpu: 0.0.40
codegen_flags: <defaults>
</compile_context>

<pallas_src>
import functools

import jax
import jax.numpy as jnp
from jax import lax
from jax.experimental import pallas as pl
from jax.experimental.pallas import tpu as pltpu


def _round_up(x, m):
    return ((x + m - 1) // m) * m


# --------------------------------------------------------------------------- #
# Kernel 1: fused Q/K/V projection (one matmul per token tile)                 #
# --------------------------------------------------------------------------- #
def _qkv_proj_kernel(x_ref, w_ref, b_ref, q_ref, k_ref, v_ref, *, qk_w):
    """One token tile of the fused projection.

    x_ref : (TN, C)      f32   token tile
    w_ref : (C, PTOT)    bf16  [Wq^T pad | Wk^T pad | Wv^T pad (+ ones column)]
    b_ref : (1, PTOT)    f32   packed biases (padding entries are zero,
                               the ones-column entry is 1.0)
    q_ref : (TN, QKW)    bf16
    k_ref : (TN, QKW)    bf16
    v_ref : (TN, CVTOT)  bf16
    """
    xt = x_ref[...].astype(jnp.bfloat16)
    proj = jnp.dot(xt, w_ref[...], preferred_element_type=jnp.float32) + b_ref[...]
    # All slice offsets are multiples of 128 (lane-tile aligned).
    q_ref[...] = proj[:, :qk_w].astype(jnp.bfloat16)
    k_ref[...] = proj[:, qk_w:2 * qk_w].astype(jnp.bfloat16)
    v_ref[...] = proj[:, 2 * qk_w:].astype(jnp.bfloat16)


# --------------------------------------------------------------------------- #
# Kernel 2: attention + residual                                               #
# --------------------------------------------------------------------------- #
def _attention_kernel(q_ref, k_ref, v_ref, x_ref, gamma_ref, o_ref, *, c, cv_pad):
    """One (batch b, query-tile qi) grid step.  No scratch, no cross-step state.

    q_ref : (1, TQ, QKW)    bf16  query tile (padded projection width)
    k_ref : (1, N, QKW)     bf16  full keys for batch b
    v_ref : (1, N, CVTOT)   bf16  columns [0:c] = V, column cv_pad = 1.0 (row-sum)
    x_ref : (1, TQ, C)      f32   residual tile
    gamma : (1,)            f32   (SMEM)
    o_ref : (1, TQ, C)      f32
    """
    # scores = Q @ K^T, contracting the zero-padded 128-lane projection dim
    # (padding is exactly zero in both operands, so the result is exact).
    scores = lax.dot_general(
        q_ref[0], k_ref[0],
        dimension_numbers=(((1,), (1,)), ((), ())),
        preferred_element_type=jnp.float32)                          # (TQ, N)

    # Max-stabilized, UNnormalized softmax numerator (normalization happens
    # after P@V, over (TQ, C) instead of (TQ, N)).
    p = jnp.exp(scores - jnp.max(scores, axis=-1, keepdims=True))    # (TQ, N) f32

    # P @ [V | ones]: the ones column delivers the softmax row-sum from the MXU.
    out_ext = jnp.dot(p.astype(jnp.bfloat16), v_ref[0],
                      preferred_element_type=jnp.float32)            # (TQ, CVTOT)
    row_sum = out_ext[:, cv_pad:cv_pad + 1]                          # (TQ, 1)
    out = out_ext[:, :c] * pl.reciprocal(row_sum, approx=True)       # (TQ, C)

    o_ref[0] = gamma_ref[0] * out + x_ref[0]


# --------------------------------------------------------------------------- #
# Tiling / VMEM heuristics                                                     #
# --------------------------------------------------------------------------- #
def _pick_tq(n):
    """Query-tile size: prefer 256 (matches the 256-row v6e/v7x MXU), capped so
    ~3 live copies of the (TQ, N) f32 score strip stay under ~12 MiB."""
    budget = 12 * 1024 * 1024
    fallback = None
    for cand in (256, 128, 64, 32, 16, 8):
        if cand <= n and n % cand == 0:
            if fallback is None:
                fallback = cand
            if 3 * cand * n * 4 <= budget:
                return cand
    return fallback if fallback is not None else n


def _pick_tn(n):
    for cand in (512, 256, 128, 64, 32, 16, 8):
        if cand <= n and n % cand == 0:
            return cand
    return n


def _vmem_limit_bytes():
    """Generation-aware scoped-VMEM limit (v5e/v6e: 128 MiB, v7x: 64 MiB/TC)."""
    try:
        cap = int(getattr(pltpu.get_tpu_info(), "vmem_capacity_bytes",
                          128 * 1024 * 1024))
    except Exception:
        cap = 128 * 1024 * 1024
    return min(64 * 1024 * 1024, int(cap * 0.6))


# --------------------------------------------------------------------------- #
# Wrapper                                                                      #
# --------------------------------------------------------------------------- #
def self_attention_pallas(x_nchw, params):
    """x_nchw: (B, C, H, W) float32.  Returns (B, C, H, W) float32."""
    B, C, H, W = x_nchw.shape
    N = H * W
    C8 = C // 8
    wq, bq, wk, bk, wv, bv, gamma = params

    QKW = _round_up(max(C8, 1), 128)   # padded Q/K projection width (lane-dense)
    CVP = _round_up(C, 128)            # padded V width (lane-dense)
    CVTOT = CVP + 128                  # + 128-wide segment holding the ones column
    PTOT = 2 * QKW + CVTOT

    # NCHW -> (B, N, C) tokens-major.
    # TODO(synk): these two transposes are extra HBM passes over the activation;
    # fuse into the producing/consuming ops if this layer becomes bandwidth-critical.
    x_bnc = jnp.transpose(x_nchw.reshape(B, C, N), (0, 2, 1)).astype(jnp.float32)

    # ---- pack weights: [Wq^T pad | Wk^T pad | Wv^T pad (+ ones column)] ----
    # Padding columns have zero weight AND zero bias, so the padded lanes of Q/K
    # contract to exactly zero; column (2*QKW + CVP) has zero weight and bias 1.0,
    # so V_ext[:, CVP] == 1.0 for every token (softmax row-sum column).
    w_cat = jnp.zeros((C, PTOT), jnp.float32)
    w_cat = w_cat.at[:, :C8].set(wq.T)
    w_cat = w_cat.at[:, QKW:QKW + C8].set(wk.T)
    w_cat = w_cat.at[:, 2 * QKW:2 * QKW + C].set(wv.T)
    w_cat = w_cat.astype(jnp.bfloat16)

    b_cat = jnp.zeros((PTOT,), jnp.float32)
    b_cat = b_cat.at[:C8].set(bq)
    b_cat = b_cat.at[QKW:QKW + C8].set(bk)
    b_cat = b_cat.at[2 * QKW:2 * QKW + C].set(bv)
    b_cat = b_cat.at[2 * QKW + CVP].set(1.0)
    b_cat = b_cat.reshape(1, PTOT)

    gamma1 = gamma.reshape(1).astype(jnp.float32)
    vmem_limit = _vmem_limit_bytes()

    # ---- kernel 1: fused QKV projection over (B*N) token tiles ----
    BN = B * N
    TN = _pick_tn(BN)
    x_tok = x_bnc.reshape(BN, C)                     # free reshape (row-major)
    q_flat, k_flat, v_flat = pl.pallas_call(
        functools.partial(_qkv_proj_kernel, qk_w=QKW),
        out_shape=(jax.ShapeDtypeStruct((BN, QKW), jnp.bfloat16),
                   jax.ShapeDtypeStruct((BN, QKW), jnp.bfloat16),
                   jax.ShapeDtypeStruct((BN, CVTOT), jnp.bfloat16)),
        grid_spec=pltpu.PrefetchScalarGridSpec(
            num_scalar_prefetch=0,
            grid=(BN // TN,),
            in_specs=[
                pl.BlockSpec((TN, C), lambda i: (i, 0)),       # x token tile
                pl.BlockSpec((C, PTOT), lambda i: (0, 0)),     # packed weights
                pl.BlockSpec((1, PTOT), lambda i: (0, 0)),     # packed biases
            ],
            out_specs=[
                pl.BlockSpec((TN, QKW), lambda i: (i, 0)),
                pl.BlockSpec((TN, QKW), lambda i: (i, 0)),
                pl.BlockSpec((TN, CVTOT), lambda i: (i, 0)),
            ],
        ),
        compiler_params=pltpu.CompilerParams(
            dimension_semantics=("parallel",),
            vmem_limit_bytes=vmem_limit,
        ),
    )(x_tok, w_cat, b_cat)

    q_all = q_flat.reshape(B, N, QKW)
    k_all = k_flat.reshape(B, N, QKW)
    v_all = v_flat.reshape(B, N, CVTOT)

    # ---- kernel 2: attention + residual, BOTH grid axes parallel ----
    TQ = _pick_tq(N)
    out_bnc = pl.pallas_call(
        functools.partial(_attention_kernel, c=C, cv_pad=CVP),
        out_shape=jax.ShapeDtypeStruct((B, N, C), jnp.float32),
        grid_spec=pltpu.PrefetchScalarGridSpec(
            num_scalar_prefetch=0,
            grid=(B, N // TQ),
            in_specs=[
                pl.BlockSpec((1, TQ, QKW), lambda b, i: (b, i, 0)),    # Q tile
                pl.BlockSpec((1, N, QKW), lambda b, i: (b, 0, 0)),     # K (per batch)
                pl.BlockSpec((1, N, CVTOT), lambda b, i: (b, 0, 0)),   # V+ones (per batch)
                pl.BlockSpec((1, TQ, C), lambda b, i: (b, i, 0)),      # x tile (residual)
                pl.BlockSpec(memory_space=pltpu.MemorySpace.SMEM),     # gamma (scalar)
            ],
            out_specs=pl.BlockSpec((1, TQ, C), lambda b, i: (b, i, 0)),
        ),
        compiler_params=pltpu.CompilerParams(
            dimension_semantics=("parallel", "parallel"),
            vmem_limit_bytes=vmem_limit,
        ),
    )(q_all, k_all, v_all, x_bnc, gamma1)

    # (B, N, C) -> (B, C, H, W)
    return jnp.transpose(out_bnc, (0, 2, 1)).reshape(B, C, H, W)


# --------------------------------------------------------------------------- #
# Pure-JAX f32 reference (mirrors the PyTorch forward exactly)                 #
# --------------------------------------------------------------------------- #
def self_attention_ref(x_nchw, params):
    wq, bq, wk, bk, wv, bv, gamma = params
    B, C, H, W = x_nchw.shape
    N = H * W
    xf = x_nchw.reshape(B, C, N)                                     # (B, C, N)
    q = jnp.einsum('oc,bcn->bon', wq, xf) + bq[None, :, None]        # (B, C//8, N)
    k = jnp.einsum('oc,bcn->bon', wk, xf) + bk[None, :, None]        # (B, C//8, N)
    v = jnp.einsum('oc,bcn->bon', wv, xf) + bv[None, :, None]        # (B, C, N)
    attn = jnp.einsum('bcq,bck->bqk', q, k)                          # (B, N, N)
    attn = jax.nn.softmax(attn, axis=-1)
    out = jnp.einsum('bqk,bck->bcq', attn, v)                        # (B, C, N)
    out = out.reshape(B, C, H, W)
    return gamma[0] * out + x_nchw


def init_params(key, C):
    C8 = C // 8
    ks = jax.random.split(key, 6)
    wq = 0.1 * jax.random.normal(ks[0], (C8, C), jnp.float32)
    bq = 0.1 * jax.random.normal(ks[1], (C8,), jnp.float32)
    wk = 0.1 * jax.random.normal(ks[2], (C8, C), jnp.float32)
    bk = 0.1 * jax.random.normal(ks[3], (C8,), jnp.float32)
    wv = 0.1 * jax.random.normal(ks[4], (C, C), jnp.float32)
    bv = 0.1 * jax.random.normal(ks[5], (C,), jnp.float32)
    # The PyTorch module inits gamma to zero; use a NONZERO gamma here so the
    # attention path is actually exercised by the correctness check.
    gamma = jnp.full((1,), 0.5, jnp.float32)
    return (wq, bq, wk, bk, wv, bv, gamma)


if __name__ == "__main__":
    key = jax.random.PRNGKey(0)
    kx, kp = jax.random.split(key)

    B, C, H, W = 2, 16, 8, 8          # C must be a multiple of 8 (in_channels // 8)
    x = jax.random.normal(kx, (B, C, H, W), jnp.float32)
    params = init_params(kp, C)

    out = self_attention_pallas(x, params)
    out = jax.block_until_ready(out)

    ref = self_attention_ref(x, params)
    assert out.shape == (B, C, H, W)
    # bf16 matmuls + approx reciprocal -> allow a small tolerance vs the f32 reference.
    assert jnp.max(jnp.abs(out - ref)) < 3e-2

    print("KERNEL_OK")
</pallas_src>

<mosaic_0001>
module attributes {stable_mosaic.version = 11 : i64} {
  func.func @_qkv_proj_kernel(%arg0: i32, %arg1: memref<128x16xf32, #tpu.memory_space<vmem>>, %arg2: memref<16x512xbf16, #tpu.memory_space<vmem>>, %arg3: memref<1x512xf32, #tpu.memory_space<vmem>>, %arg4: memref<128x128xbf16, #tpu.memory_space<vmem>>, %arg5: memref<128x128xbf16, #tpu.memory_space<vmem>>, %arg6: memref<128x256xbf16, #tpu.memory_space<vmem>>) attributes {dimension_semantics = [#tpu.dimension_semantics<parallel>], iteration_bounds = array<i64: 1>, scalar_prefetch = 0 : i64, scratch_operands = 0 : i64, tpu.core_type = #tpu.core_type<tc>, window_params = [{transform_indices = @transform_0, window_bounds = array<i64: 128, 16>}, {pipeline_mode = #tpu.pipeline_mode<synchronous>, transform_indices = @transform_1, window_bounds = array<i64: 16, 512>}, {pipeline_mode = #tpu.pipeline_mode<synchronous>, transform_indices = @transform_2, window_bounds = array<i64: 1, 512>}, {transform_indices = @transform_3, window_bounds = array<i64: 128, 128>}, {transform_indices = @transform_4, window_bounds = array<i64: 128, 128>}, {transform_indices = @transform_5, window_bounds = array<i64: 128, 256>}]} {
    %c0 = arith.constant 0 : index
    %c0_0 = arith.constant 0 : index
    %0 = vector.load %arg1[%c0, %c0_0] : memref<128x16xf32, #tpu.memory_space<vmem>>, vector<128x16xf32>
    %1 = arith.truncf %0 : vector<128x16xf32> to vector<128x16xbf16>
    %c0_1 = arith.constant 0 : index
    %c0_2 = arith.constant 0 : index
    %2 = vector.load %arg2[%c0_1, %c0_2] : memref<16x512xbf16, #tpu.memory_space<vmem>>, vector<16x512xbf16>
    %cst = arith.constant dense<0.000000e+00> : vector<128x512xf32>
    %3 = tpu.matmul %1, %2, %cst {dimension_numbers = #tpu.dot_dimension_numbers<[1], [0], [0], [1], [0, 0, 1, 1], [], []>} : vector<128x16xbf16>, vector<16x512xbf16>, vector<128x512xf32> -> vector<128x512xf32>
    %c0_3 = arith.constant 0 : index
    %c0_4 = arith.constant 0 : index
    %4 = vector.load %arg3[%c0_3, %c0_4] : memref<1x512xf32, #tpu.memory_space<vmem>>, vector<1x512xf32>
    %5 = vector.broadcast %4 : vector<1x512xf32> to vector<128x512xf32>
    %6 = arith.addf %3, %5 : vector<128x512xf32>
    %7 = vector.extract_strided_slice %6 {offsets = [0, 0], sizes = [128, 128], strides = [1, 1]} : vector<128x512xf32> to vector<128x128xf32>
    %8 = arith.truncf %7 : vector<128x128xf32> to vector<128x128xbf16>
    %c0_5 = arith.constant 0 : index
    %c0_6 = arith.constant 0 : index
    %9 = vector.load %arg4[%c0_5, %c0_6] : memref<128x128xbf16, #tpu.memory_space<vmem>>, vector<128x128xbf16>
    tpu.vector_store %arg4[%c0_5, %c0_6], %8 {strides = array<i32>} : memref<128x128xbf16, #tpu.memory_space<vmem>>, vector<128x128xbf16>,
    %10 = vector.extract_strided_slice %6 {offsets = [0, 128], sizes = [128, 128], strides = [1, 1]} : vector<128x512xf32> to vector<128x128xf32>
    %11 = arith.truncf %10 : vector<128x128xf32> to vector<128x128xbf16>
    %c0_7 = arith.constant 0 : index
    %c0_8 = arith.constant 0 : index
    %12 = vector.load %arg5[%c0_7, %c0_8] : memref<128x128xbf16, #tpu.memory_space<vmem>>, vector<128x128xbf16>
    tpu.vector_store %arg5[%c0_7, %c0_8], %11 {strides = array<i32>} : memref<128x128xbf16, #tpu.memory_space<vmem>>, vector<128x128xbf16>,
    %13 = vector.extract_strided_slice %6 {offsets = [0, 256], sizes = [128, 256], strides = [1, 1]} : vector<128x512xf32> to vector<128x256xf32>
    %14 = arith.truncf %13 : vector<128x256xf32> to vector<128x256xbf16>
    %c0_9 = arith.constant 0 : index
    %c0_10 = arith.constant 0 : index
    %15 = vector.load %arg6[%c0_9, %c0_10] : memref<128x256xbf16, #tpu.memory_space<vmem>>, vector<128x256xbf16>
    tpu.vector_store %arg6[%c0_9, %c0_10], %14 {strides = array<i32>} : memref<128x256xbf16, #tpu.memory_space<vmem>>, vector<128x256xbf16>,
    return
  }
  func.func @transform_0(%arg0: i32) -> (i32, i32) {
    %c0_i32 = arith.constant 0 : i32
    %c0_i32_0 = arith.constant 0 : i32
    return %arg0, %c0_i32 : i32, i32
  }
  func.func @transform_1(%arg0: i32) -> (i32, i32) {
    %c0_i32 = arith.constant 0 : i32
    %c0_i32_0 = arith.constant 0 : i32
    %c0_i32_1 = arith.constant 0 : i32
    return %c0_i32, %c0_i32_0 : i32, i32
  }
  func.func @transform_2(%arg0: i32) -> (i32, i32) {
    %c0_i32 = arith.constant 0 : i32
    %c0_i32_0 = arith.constant 0 : i32
    %c0_i32_1 = arith.constant 0 : i32
    return %c0_i32, %c0_i32_0 : i32, i32
  }
  func.func @transform_3(%arg0: i32) -> (i32, i32) {
    %c0_i32 = arith.constant 0 : i32
    %c0_i32_0 = arith.constant 0 : i32
    return %arg0, %c0_i32 : i32, i32
  }
  func.func @transform_4(%arg0: i32) -> (i32, i32) {
    %c0_i32 = arith.constant 0 : i32
    %c0_i32_0 = arith.constant 0 : i32
    return %arg0, %c0_i32 : i32, i32
  }
  func.func @transform_5(%arg0: i32) -> (i32, i32) {
    %c0_i32 = arith.constant 0 : i32
    %c0_i32_0 = arith.constant 0 : i32
    return %arg0, %c0_i32 : i32, i32
  }
}

</mosaic_0001>

<bundles_post_ra>
// kernel: tpu_custom_call.1
= control target key start
LH: loop header
LB: loop body
LE: loop exit
PB: predicated region body
PF: predicated region fallthrough
CT: control target
= control target key end

     0   :  { %11 = vsyncpa [#allocation3], 0  ;;  %s1293_s0 = inlined_call_operand.hbm [shape: f32[128,16], index: 0, kind: input, shape index: {}]   ;;  %s1294_s1 = inlined_call_operand.hbm [shape: bf16[16,512], index: 1, kind: input, shape index: {}]   ;;  %s1295_s2 = inlined_call_operand.hbm [shape: f32[1,512], index: 2, kind: input, shape index: {}]   ;;  %s1296_s3 = inlined_call_operand.hbm [shape: bf16[128,128], index: 3, kind: output, shape index: {0}]   ;;  %s1297_s4 = inlined_call_operand.hbm [shape: bf16[128,128], index: 4, kind: output, shape index: {1}]   ;;  %s1298_s5 = inlined_call_operand.hbm [shape: bf16[128,256], index: 5, kind: output, shape index: {2}]  }
   0x1   :  { %12 = vsyncpa [#allocation6], 0 }
   0x2   :  { %13 = vsyncpa [#allocation4], 0 }
   0x3   :  { %14 = vsyncpa [#allocation10], 0  ;;  %s1070_s18 = smov [#allocation5]   ;;  %s930_s22 = scalar_lea.hbm %s1294_s1, 512 }
   0x4   :  { %s32_s19 = sshll.u32 %s1070_s18, 4  ;;  %p931_p0 = scmp.ne.s32.totalorder %s1294_s1, %s930_s22  ;;  %s33_s19 = int_to_ptr.vmem [resolvable:$true] %s32_s19 }
   0x5   :  { %p934_p1 = scmp.lt.u32.totalorder %s930_s22, %s1294_s1 }
   0x7   :  { %p936_p2 = pnand %p934_p1, %p931_p0 }
   0x9   :  { %939 = shalt.err (!%p936_p2)
}
   0xa   :  { %s940_s27 = scalar_lea.vmem %s33_s19, 512  ;;  %p945_p4 = scmp.lt.s32.totalorder %s33_s19, %s33_s19 }
   0xb   :  { %p941_p3 = scmp.ne.s32.totalorder %s33_s19, %s940_s27  ;;  %p946_p5 = scmp.lt.s32.totalorder %s940_s27, %s940_s27 }
   0xd   :  { %p947_p6 = por %p946_p5, %p945_p4 }
   0xf   :  { %p948_p7 = pnand %p947_p6, %p941_p3 }
  0x11   :  { %951 = shalt.err (!%p948_p7)
}
  0x12   :  { %s1071_s28 = smov 256   ;;  %s1072_s29 = smov 16  }
  0x13   :  { %38 = dma.hbm_to_vmem [thread:$0]  %s1294_s1, 512, %s33_s19, [#allocation6], %s1071_s28, %s1071_s28, %s1072_s29  }
  0x14   :  { %s1073_s7 = smov [#allocation2]   ;;  %s952_s11 = scalar_lea.hbm %s1293_s0, 2048 }
  0x15   :  { %s20_s8 = sshll.u32 %s1073_s7, 4  ;;  %p953_p8 = scmp.ne.s32.totalorder %s1293_s0, %s952_s11  ;;  %s21_s8 = int_to_ptr.vmem [resolvable:$true] %s20_s8 }
  0x16   :  { %p956_p9 = scmp.lt.u32.totalorder %s952_s11, %s1293_s0 }
  0x18   :  { %p958_p10 = pnand %p956_p9, %p953_p8 }
  0x1a   :  { %961 = shalt.err (!%p958_p10)
}
  0x1b   :  { %s962_s16 = scalar_lea.vmem %s21_s8, 2048  ;;  %p967_p12 = scmp.lt.s32.totalorder %s21_s8, %s21_s8 }
  0x1c   :  { %p963_p11 = scmp.ne.s32.totalorder %s21_s8, %s962_s16  ;;  %p968_p13 = scmp.lt.s32.totalorder %s962_s16, %s962_s16 }
  0x1e   :  { %p969_p0 = por %p968_p13, %p967_p12 }
  0x20   :  { %p970_p1 = pnand %p969_p0, %p963_p11 }
  0x22   :  { %973 = shalt.err (!%p970_p1)
}
  0x23   :  { %s1074_s1 = smov 128   ;;  %s1075_s17 = smov 8  }
  0x24   :  { %26 = dma.hbm_to_vmem [thread:$0]  %s1293_s0, 2048, %s21_s8, [#allocation3], %s1074_s1, %s1074_s1, %s1075_s17  }
  0x25   :  { %s1076_s20 = smov [#allocation7]   ;;  %s974_s24 = scalar_lea.hbm %s1295_s2, 64 }
  0x26   :  { %s45_s21 = sshll.u32 %s1076_s20, 4  ;;  %p975_p2 = scmp.ne.s32.totalorder %s1295_s2, %s974_s24  ;;  %s46_s21 = int_to_ptr.vmem [resolvable:$true] %s45_s21 }
  0x27   :  { %p978_p3 = scmp.lt.u32.totalorder %s974_s24, %s1295_s2 }
  0x29   :  { %p980_p4 = pnand %p978_p3, %p975_p2 }
  0x2b   :  { %983 = shalt.err (!%p980_p4)
}
  0x2c   :  { %s984_s29 = scalar_lea.vmem %s46_s21, 64  ;;  %p989_p6 = scmp.lt.s32.totalorder %s46_s21, %s46_s21 }
  0x2d   :  { %p985_p5 = scmp.ne.s32.totalorder %s46_s21, %s984_s29  ;;  %p990_p7 = scmp.lt.s32.totalorder %s984_s29, %s984_s29 }
  0x2f   :  { %p991_p8 = por %p990_p7, %p989_p6 }
  0x31   :  { %p992_p9 = pnand %p991_p8, %p985_p5 }
  0x33   :  { %995 = shalt.err (!%p992_p9)
}
  0x34   :  { %48 = dma.hbm_to_vmem [thread:$0]  %s1295_s2, 64, %s46_s21, [#allocation6]  }
  0x35   :  { %1062 = dma.done.wait [#allocation3], 2048  }
  0x36   :  { %1063 = vsyncadd [#allocation3], 4294965248 }
  0x37   :  { %1064 = dma.done.wait [#allocation6], 576  }
  0x38   :  { %1065 = vsyncadd [#allocation6], 4294966720  ;;  %v1077_v0 = vmov 0   ;;  %v924_v1 = vld [vmem:[#allocation5 + $0x4] ss:$16 sps:$4 sm:$0xff]   ;;  %v60_v6 = vld [vmem:[#allocation2 + $0x8] sm:$0xff]  ;;  %v89_v29 = vlaneseq }
  0x39   :  { %186 = vmatprep.mubr.bf16.mxu0 %v1077_v0  ;;  %299 = vmatprep.mubr.bf16.mxu1 %v1077_v0  ;;  %v926_v2 = vld [vmem:[#allocation5 + $0xc] ss:$16 sps:$4 sm:$0xff]   ;;  %v928_v3 = vld [vmem:[#allocation5] ss:$16 sps:$4 sm:$0xff]   ;;  %v929_v4 = vld [vmem:[#allocation5 + $0x8] ss:$16 sps:$4 sm:$0xff]  }
  0x3a   :  { %154 = vmatprep.subr.bf16.mxu0 %v924_v1  ;;  %v59_v5 = vld [vmem:[#allocation2] sm:$0xff]  ;;  %267 = vmatprep.subr.bf16.mxu1 %v926_v2  ;;  %vm129_vm0 = vcmask 130048   ;;  %v61_v8 = vld [vmem:[#allocation2 + $0x10] sm:$0xff]  ;;  %v62_v9 = vld [vmem:[#allocation2 + $0x18] sm:$0xff]  ;;  %v90_v30 = vshrl.u32 %v89_v29, 7  ;;  %s1078_s2 = smov [#allocation8]  }
  0x3b   :  { %155 = vmatpush1.bf16.msra.mxu0 %v928_v3  ;;  %268 = vmatpush1.bf16.msra.mxu1 %v929_v4  ;;  %v75_v7 = vpack.c.bf16 %v60_v6, %v59_v5  ;;  %v76_v10 = vpack.c.bf16 %v62_v9, %v61_v8  ;;  %v63_v11 = vld [vmem:[#allocation2 + $0x20] sm:$0xff]  ;;  %v64_v12 = vld [vmem:[#allocation2 + $0x28] sm:$0xff]  ;;  %v65_v14 = vld [vmem:[#allocation2 + $0x30] sm:$0xff]  ;;  %s657_s6 = sshll.u32 %s1078_s2, 4  ;;  %s1079_s7 = smov [#allocation9]   ;;  %s658_s6 = int_to_ptr.vmem [resolvable:$true] %s657_s6 }
  0x3c   :  { %v77_v13 = vpack.c.bf16 %v64_v12, %v63_v11  ;;  %v66_v15 = vld [vmem:[#allocation2 + $0x38] sm:$0xff]  ;;  %v67_v17 = vld [vmem:[#allocation2 + $0x40] sm:$0xff]  ;;  %v68_v18 = vld [vmem:[#allocation2 + $0x48] sm:$0xff]  ;;  %v99_v31 = vsub.s32 2, %v90_v30  ;;  %v103_v33 = vsub.s32 3, %v90_v30  ;;  %v91_v34 = vsub.s32 0, %v90_v30  ;;  %p1001_p11 = scmp.lt.s32.totalorder %s658_s6, %s658_s6 }
  0x3d   :  { %v78_v16 = vpack.c.bf16 %v66_v15, %v65_v14  ;;  %v79_v19 = vpack.c.bf16 %v68_v18, %v67_v17  ;;  %v69_v20 = vld [vmem:[#allocation2 + $0x50] sm:$0xff]  ;;  %v70_v21 = vld [vmem:[#allocation2 + $0x58] sm:$0xff]  ;;  %v71_v23 = vld [vmem:[#allocation2 + $0x60] sm:$0xff]  ;;  %v95_v35 = vsub.s32 1, %v90_v30  ;;  %s669_s8 = sshll.u32 %s1079_s7, 4  ;;  %s1080_s9 = smov [#allocation11]   ;;  %s1240_s8 = int_to_ptr.vmem [resolvable:$true] %s669_s8 }
  0x3e   :  { %705 = vmatmul.mubr.msk.bf16.vlgmr.msra.gmra.mrb[0].mxu0 %vm129_vm0, %v75_v7  ;;  %713 = vmatmul.mubr.msk.bf16.vlgmr.msra.gmra.mrb[0].mxu1 %vm129_vm0, %v75_v7  ;;  %v80_v22 = vpack.c.bf16 %v70_v21, %v69_v20  ;;  %v72_v24 = vld [vmem:[#allocation2 + $0x68] sm:$0xff]  ;;  %v73_v26 = vld [vmem:[#allocation2 + $0x70] sm:$0xff]  ;;  %v74_v27 = vld [vmem:[#allocation2 + $0x78] sm:$0xff]  ;;  %s681_s10 = sshll.u32 %s1080_s9, 4  ;;  %s996_s11 = scalar_lea.vmem %s658_s6, 1024  ;;  %s1242_s10 = int_to_ptr.vmem [resolvable:$true] %s681_s10 }
  0x3f   :  { %196 = vmatprep.mubr.bf16.mxu0 %v1077_v0  ;;  %309 = vmatprep.mubr.bf16.mxu1 %v1077_v0  ;;  %v81_v25 = vpack.c.bf16 %v72_v24, %v71_v23  ;;  %v82_v28 = vpack.c.bf16 %v74_v27, %v73_v26  ;;  %v87_v32 = vld [vmem:[#allocation7] sm:$0xf]  ;;  %p997_p10 = scmp.ne.s32.totalorder %s658_s6, %s996_s11  ;;  %p1002_p12 = scmp.lt.s32.totalorder %s996_s11, %s996_s11 }
  0x40   :  { %v1168_v36 = vrot.slane %v87_v32, %v99_v31  ;;  %v1170_v37 = vrot.slane %v87_v32, %v103_v33  ;;  %v1172_v38 = vrot.slane %v87_v32, %v91_v34  ;;  %v1174_v41 = vrot.slane %v87_v32, %v95_v35 }
  0x41   :  { %p1003_p13 = por %p1002_p12, %p1001_p11 }
  0x43   :  { %p1004_p0 = pnand %p1003_p13, %p997_p10 }
  0x46   :  { %706 = vmatmul.mubr.msk.bf16.gmra.mrb[4].mxu0 %vm129_vm0, %v76_v10  ;;  %714 = vmatmul.mubr.msk.bf16.gmra.mrb[4].mxu1 %vm129_vm0, %v76_v10 }
  0x47   :  { %206 = vmatprep.mubr.bf16.mxu0 %v1077_v0  ;;  %319 = vmatprep.mubr.bf16.mxu1 %v1077_v0 }
  0x4e   :  { %707 = vmatmul.mubr.msk.bf16.gmra.mrb[8].mxu0 %vm129_vm0, %v77_v13  ;;  %715 = vmatmul.mubr.msk.bf16.gmra.mrb[8].mxu1 %vm129_vm0, %v77_v13 }
  0x4f   :  { %216 = vmatprep.mubr.bf16.mxu0 %v1077_v0  ;;  %329 = vmatprep.mubr.bf16.mxu1 %v1077_v0 }
  0x56   :  { %708 = vmatmul.mubr.msk.bf16.gmra.mrb[12].mxu0 %vm129_vm0, %v78_v16  ;;  %716 = vmatmul.mubr.msk.bf16.gmra.mrb[12].mxu1 %vm129_vm0, %v78_v16 }
  0x57   :  { %226 = vmatprep.mubr.bf16.mxu0 %v1077_v0  ;;  %339 = vmatprep.mubr.bf16.mxu1 %v1077_v0 }
  0x5e   :  { %709 = vmatmul.mubr.msk.bf16.gmra.mrb[16].mxu0 %vm129_vm0, %v79_v19  ;;  %717 = vmatmul.mubr.msk.bf16.gmra.mrb[16].mxu1 %vm129_vm0, %v79_v19 }
  0x5f   :  { %236 = vmatprep.mubr.bf16.mxu0 %v1077_v0  ;;  %349 = vmatprep.mubr.bf16.mxu1 %v1077_v0 }
  0x66   :  { %710 = vmatmul.mubr.msk.bf16.gmra.mrb[20].mxu0 %vm129_vm0, %v80_v22  ;;  %718 = vmatmul.mubr.msk.bf16.gmra.mrb[20].mxu1 %vm129_vm0, %v80_v22 }
  0x67   :  { %246 = vmatprep.mubr.bf16.mxu0 %v1077_v0  ;;  %359 = vmatprep.mubr.bf16.mxu1 %v1077_v0 }
  0x6e   :  { %711 = vmatmul.mubr.msk.bf16.gmra.mrb[24].mxu0 %vm129_vm0, %v81_v25  ;;  %719 = vmatmul.mubr.msk.bf16.gmra.mrb[24].mxu1 %vm129_vm0, %v81_v25 }
  0x6f   :  { %256 = vmatprep.mubr.bf16.mxu0 %v1077_v0  ;;  %369 = vmatprep.mubr.bf16.mxu1 %v1077_v0 }
  0x76   :  { %712 = vmatmul.mubr.msk.bf16.gmra.mrb[28].mxu0 %vm129_vm0, %v82_v28  ;;  %720 = vmatmul.mubr.msk.bf16.gmra.mrb[28].mxu1 %vm129_vm0, %v82_v28 }
 0x111   :  { %v188_v39 = vpop.f32.mrb[0].mxu0  ;;  %v301_v40 = vpop.f32.mrb[0].mxu1 }
 0x112   :  { %v302_v42 = vadd.f32 %v301_v40, %v1168_v36  ;;  %v190_v43 = vpop.f32.mrb[1].mxu0  ;;  %v303_v44 = vpop.f32.mrb[1].mxu1  ;;  %v189_v48 = vadd.f32 %v188_v39, %v1172_v38 }
 0x113   :  { %v304_v45 = vadd.f32 %v303_v44, %v1170_v37  ;;  %v192_v46 = vpop.f32.mrb[2].mxu0  ;;  %v305_v47 = vpop.f32.mrb[2].mxu1  ;;  %v191_v53 = vadd.f32 %v190_v43, %v1174_v41 }
 0x114   :  { %v193_v49 = vadd.f32 %v192_v46, %v1172_v38  ;;  %v306_v50 = vadd.f32 %v305_v47, %v1168_v36  ;;  %v194_v51 = vpop.f32.mrb[3].mxu0  ;;  %v307_v52 = vpop.f32.mrb[3].mxu1 }
 0x115   :  { %v801_v54 = vpack.c.bf16 %v304_v45, %v302_v42  ;;  %v195_v55 = vadd.f32 %v194_v51, %v1174_v41  ;;  %v308_v56 = vadd.f32 %v307_v52, %v1170_v37 }
 0x116   :  { %v820_v57 = vpack.c.bf16 %v193_v49, %v189_v48 }
 0x117   :  { %636 = vst [vmem:[#allocation11] sm:$0xff] %v801_v54  ;;  %v860_v58 = vpack.c.bf16 %v195_v55, %v191_v53  ;;  %v802_v59 = vpack.c.bf16 %v308_v56, %v306_v50 }
 0x118   :  { %821 = vst [vmem:[#allocation8] sm:$0xff] %v820_v57  }
 0x119   :  { %861 = vst [vmem:[#allocation9] sm:$0xff] %v860_v58   ;;  %637 = vst [vmem:[#allocation11 + $0x8] sm:$0xff] %v802_v59  ;;  %v198_v60 = vpop.f32.mrb[4].mxu0  ;;  %v311_v61 = vpop.f32.mrb[4].mxu1 }
 0x11a   :  { %v312_v62 = vadd.f32 %v311_v61, %v1168_v36  ;;  %v200_v63 = vpop.f32.mrb[5].mxu0  ;;  %v313_v0 = vpop.f32.mrb[5].mxu1  ;;  %v199_v4 = vadd.f32 %v198_v60, %v1172_v38 }
 0x11b   :  { %v314_v1 = vadd.f32 %v313_v0, %v1170_v37  ;;  %v202_v2 = vpop.f32.mrb[6].mxu0  ;;  %v315_v3 = vpop.f32.mrb[6].mxu1  ;;  %v201_v9 = vadd.f32 %v200_v63, %v1174_v41 }
 0x11c   :  { %v203_v5 = vadd.f32 %v202_v2, %v1172_v38  ;;  %v316_v6 = vadd.f32 %v315_v3, %v1168_v36  ;;  %v204_v7 = vpop.f32.mrb[7].mxu0  ;;  %v317_v8 = vpop.f32.mrb[7].mxu1 }
 0x11d   :  { %v803_v10 = vpack.c.bf16 %v314_v1, %v312_v62  ;;  %v205_v11 = vadd.f32 %v204_v7, %v1174_v41  ;;  %v318_v12 = vadd.f32 %v317_v8, %v1170_v37 }
 0x11e   :  { %v825_v13 = vpack.c.bf16 %v203_v5, %v199_v4 }
 0x11f   :  { %638 = vst [vmem:[#allocation11 + $0x10] sm:$0xff] %v803_v10  ;;  %v865_v14 = vpack.c.bf16 %v205_v11, %v201_v9  ;;  %v804_v15 = vpack.c.bf16 %v318_v12, %v316_v6 }
 0x120   :  { %897 = vst [vmem:[#allocation8 + $0x8] sm:$0xff] %v825_v13  }
 0x121   :  { %904 = vst [vmem:[#allocation9 + $0x8] sm:$0xff] %v865_v14   ;;  %639 = vst [vmem:[#allocation11 + $0x18] sm:$0xff] %v804_v15  ;;  %v208_v16 = vpop.f32.mrb[8].mxu0  ;;  %v321_v17 = vpop.f32.mrb[8].mxu1 }
 0x122   :  { %v322_v18 = vadd.f32 %v321_v17, %v1168_v36  ;;  %v210_v19 = vpop.f32.mrb[9].mxu0  ;;  %v323_v20 = vpop.f32.mrb[9].mxu1  ;;  %v209_v24 = vadd.f32 %v208_v16, %v1172_v38 }
 0x123   :  { %v324_v21 = vadd.f32 %v323_v20, %v1170_v37  ;;  %v212_v22 = vpop.f32.mrb[10].mxu0  ;;  %v325_v23 = vpop.f32.mrb[10].mxu1  ;;  %v211_v29 = vadd.f32 %v210_v19, %v1174_v41 }
 0x124   :  { %v213_v25 = vadd.f32 %v212_v22, %v1172_v38  ;;  %v326_v26 = vadd.f32 %v325_v23, %v1168_v36  ;;  %v214_v27 = vpop.f32.mrb[11].mxu0  ;;  %v327_v28 = vpop.f32.mrb[11].mxu1 }
 0x125   :  { %v805_v30 = vpack.c.bf16 %v324_v21, %v322_v18  ;;  %v215_v31 = vadd.f32 %v214_v27, %v1174_v41  ;;  %v328_v32 = vadd.f32 %v327_v28, %v1170_v37 }
 0x126   :  { %v830_v33 = vpack.c.bf16 %v213_v25, %v209_v24 }
 0x127   :  { %640 = vst [vmem:[#allocation11 + $0x20] sm:$0xff] %v805_v30  ;;  %v870_v34 = vpack.c.bf16 %v215_v31, %v211_v29  ;;  %v806_v35 = vpack.c.bf16 %v328_v32, %v326_v26 }
 0x128   :  { %898 = vst [vmem:[#allocation8 + $0x10] sm:$0xff] %v830_v33  }
 0x129   :  { %905 = vst [vmem:[#allocation9 + $0x10] sm:$0xff] %v870_v34   ;;  %641 = vst [vmem:[#allocation11 + $0x28] sm:$0xff] %v806_v35  ;;  %v218_v39 = vpop.f32.mrb[12].mxu0  ;;  %v331_v40 = vpop.f32.mrb[12].mxu1 }
 0x12a   :  { %v332_v42 = vadd.f32 %v331_v40, %v1168_v36  ;;  %v220_v43 = vpop.f32.mrb[13].mxu0  ;;  %v333_v44 = vpop.f32.mrb[13].mxu1  ;;  %v219_v48 = vadd.f32 %v218_v39, %v1172_v38 }
 0x12b   :  { %v334_v45 = vadd.f32 %v333_v44, %v1170_v37  ;;  %v222_v46 = vpop.f32.mrb[14].mxu0  ;;  %v335_v47 = vpop.f32.mrb[14].mxu1  ;;  %v221_v53 = vadd.f32 %v220_v43, %v1174_v41 }
 0x12c   :  { %v223_v49 = vadd.f32 %v222_v46, %v1172_v38  ;;  %v336_v50 = vadd.f32 %v335_v47, %v1168_v36  ;;  %v224_v51 = vpop.f32.mrb[15].mxu0  ;;  %v337_v52 = vpop.f32.mrb[15].mxu1 }
 0x12d   :  { %v807_v54 = vpack.c.bf16 %v334_v45, %v332_v42  ;;  %v225_v55 = vadd.f32 %v224_v51, %v1174_v41  ;;  %v338_v56 = vadd.f32 %v337_v52, %v1170_v37 }
 0x12e   :  { %v835_v57 = vpack.c.bf16 %v223_v49, %v219_v48 }
 0x12f   :  { %642 = vst [vmem:[#allocation11 + $0x30] sm:$0xff] %v807_v54  ;;  %v875_v58 = vpack.c.bf16 %v225_v55, %v221_v53  ;;  %v808_v59 = vpack.c.bf16 %v338_v56, %v336_v50 }
 0x130   :  { %899 = vst [vmem:[#allocation8 + $0x18] sm:$0xff] %v835_v57  }
 0x131   :  { %906 = vst [vmem:[#allocation9 + $0x18] sm:$0xff] %v875_v58   ;;  %643 = vst [vmem:[#allocation11 + $0x38] sm:$0xff] %v808_v59  ;;  %v228_v60 = vpop.f32.mrb[16].mxu0  ;;  %v341_v61 = vpop.f32.mrb[16].mxu1 }
 0x132   :  { %v342_v62 = vadd.f32 %v341_v61, %v1168_v36  ;;  %v230_v63 = vpop.f32.mrb[17].mxu0  ;;  %v343_v0 = vpop.f32.mrb[17].mxu1  ;;  %v229_v4 = vadd.f32 %v228_v60, %v1172_v38 }
 0x133   :  { %v344_v1 = vadd.f32 %v343_v0, %v1170_v37  ;;  %v232_v2 = vpop.f32.mrb[18].mxu0  ;;  %v345_v3 = vpop.f32.mrb[18].mxu1  ;;  %v231_v9 = vadd.f32 %v230_v63, %v1174_v41 }
 0x134   :  { %v233_v5 = vadd.f32 %v232_v2, %v1172_v38  ;;  %v346_v6 = vadd.f32 %v345_v3, %v1168_v36  ;;  %v234_v7 = vpop.f32.mrb[19].mxu0  ;;  %v347_v8 = vpop.f32.mrb[19].mxu1 }
 0x135   :  { %v809_v10 = vpack.c.bf16 %v344_v1, %v342_v62  ;;  %v235_v11 = vadd.f32 %v234_v7, %v1174_v41  ;;  %v348_v12 = vadd.f32 %v347_v8, %v1170_v37 }
 0x136   :  { %v840_v13 = vpack.c.bf16 %v233_v5, %v229_v4 }
 0x137   :  { %644 = vst [vmem:[#allocation11 + $0x40] sm:$0xff] %v809_v10  ;;  %v880_v14 = vpack.c.bf16 %v235_v11, %v231_v9  ;;  %v810_v15 = vpack.c.bf16 %v348_v12, %v346_v6 }
 0x138   :  { %900 = vst [vmem:[#allocation8 + $0x20] sm:$0xff] %v840_v13  }
 0x139   :  { %907 = vst [vmem:[#allocation9 + $0x20] sm:$0xff] %v880_v14   ;;  %645 = vst [vmem:[#allocation11 + $0x48] sm:$0xff] %v810_v15  ;;  %v238_v16 = vpop.f32.mrb[20].mxu0  ;;  %v351_v17 = vpop.f32.mrb[20].mxu1 }
 0x13a   :  { %v352_v18 = vadd.f32 %v351_v17, %v1168_v36  ;;  %v240_v19 = vpop.f32.mrb[21].mxu0  ;;  %v353_v20 = vpop.f32.mrb[21].mxu1  ;;  %v239_v24 = vadd.f32 %v238_v16, %v1172_v38 }
 0x13b   :  { %v354_v21 = vadd.f32 %v353_v20, %v1170_v37  ;;  %v242_v22 = vpop.f32.mrb[22].mxu0  ;;  %v355_v23 = vpop.f32.mrb[22].mxu1  ;;  %v241_v29 = vadd.f32 %v240_v19, %v1174_v41 }
 0x13c   :  { %v243_v25 = vadd.f32 %v242_v22, %v1172_v38  ;;  %v356_v26 = vadd.f32 %v355_v23, %v1168_v36  ;;  %v244_v27 = vpop.f32.mrb[23].mxu0  ;;  %v357_v28 = vpop.f32.mrb[23].mxu1 }
 0x13d   :  { %v811_v30 = vpack.c.bf16 %v354_v21, %v352_v18  ;;  %v245_v31 = vadd.f32 %v244_v27, %v1174_v41  ;;  %v358_v32 = vadd.f32 %v357_v28, %v1170_v37 }
 0x13e   :  { %v845_v33 = vpack.c.bf16 %v243_v25, %v239_v24 }
 0x13f   :  { %646 = vst [vmem:[#allocation11 + $0x50] sm:$0xff] %v811_v30  ;;  %v885_v34 = vpack.c.bf16 %v245_v31, %v241_v29  ;;  %v812_v35 = vpack.c.bf16 %v358_v32, %v356_v26 }
 0x140   :  { %901 = vst [vmem:[#allocation8 + $0x28] sm:$0xff] %v845_v33  }
 0x141   :  { %908 = vst [vmem:[#allocation9 + $0x28] sm:$0xff] %v885_v34   ;;  %647 = vst [vmem:[#allocation11 + $0x58] sm:$0xff] %v812_v35  ;;  %v248_v39 = vpop.f32.mrb[24].mxu0  ;;  %v361_v40 = vpop.f32.mrb[24].mxu1 }
 0x142   :  { %v362_v42 = vadd.f32 %v361_v40, %v1168_v36  ;;  %v250_v43 = vpop.f32.mrb[25].mxu0  ;;  %v363_v44 = vpop.f32.mrb[25].mxu1  ;;  %v249_v48 = vadd.f32 %v248_v39, %v1172_v38 }
 0x143   :  { %v364_v45 = vadd.f32 %v363_v44, %v1170_v37  ;;  %v252_v46 = vpop.f32.mrb[26].mxu0  ;;  %v365_v47 = vpop.f32.mrb[26].mxu1  ;;  %v251_v53 = vadd.f32 %v250_v43, %v1174_v41 }
 0x144   :  { %v253_v49 = vadd.f32 %v252_v46, %v1172_v38  ;;  %v366_v50 = vadd.f32 %v365_v47, %v1168_v36  ;;  %v254_v51 = vpop.f32.mrb[27].mxu0  ;;  %v367_v52 = vpop.f32.mrb[27].mxu1 }
 0x145   :  { %v813_v54 = vpack.c.bf16 %v364_v45, %v362_v42  ;;  %v255_v55 = vadd.f32 %v254_v51, %v1174_v41  ;;  %v368_v56 = vadd.f32 %v367_v52, %v1170_v37 }
 0x146   :  { %v850_v57 = vpack.c.bf16 %v253_v49, %v249_v48 }
 0x147   :  { %648 = vst [vmem:[#allocation11 + $0x60] sm:$0xff] %v813_v54  ;;  %v890_v58 = vpack.c.bf16 %v255_v55, %v251_v53  ;;  %v814_v59 = vpack.c.bf16 %v368_v56, %v366_v50 }
 0x148   :  { %902 = vst [vmem:[#allocation8 + $0x30] sm:$0xff] %v850_v57  }
 0x149   :  { %909 = vst [vmem:[#allocation9 + $0x30] sm:$0xff] %v890_v58   ;;  %649 = vst [vmem:[#allocation11 + $0x68] sm:$0xff] %v814_v59  ;;  %v258_v60 = vpop.f32.mrb[28].mxu0  ;;  %v371_v61 = vpop.f32.mrb[28].mxu1 }
 0x14a   :  { %v372_v62 = vadd.f32 %v371_v61, %v1168_v36  ;;  %v260_v63 = vpop.f32.mrb[29].mxu0  ;;  %v373_v0 = vpop.f32.mrb[29].mxu1  ;;  %v259_v4 = vadd.f32 %v258_v60, %v1172_v38 }
 0x14b   :  { %v374_v1 = vadd.f32 %v373_v0, %v1170_v37  ;;  %v262_v2 = vpop.f32.mrb[30].mxu0  ;;  %v375_v3 = vpop.f32.mrb[30].mxu1  ;;  %v261_v9 = vadd.f32 %v260_v63, %v1174_v41 }
 0x14c   :  { %v263_v5 = vadd.f32 %v262_v2, %v1172_v38  ;;  %v376_v6 = vadd.f32 %v375_v3, %v1168_v36  ;;  %v264_v7 = vpop.f32.mrb[31].mxu0  ;;  %v377_v8 = vpop.f32.mrb[31].mxu1 }
 0x14d   :  { %v815_v10 = vpack.c.bf16 %v374_v1, %v372_v62  ;;  %v265_v11 = vadd.f32 %v264_v7, %v1174_v41  ;;  %v378_v12 = vadd.f32 %v377_v8, %v1170_v37 }
 0x14e   :  { %v855_v13 = vpack.c.bf16 %v263_v5, %v259_v4 }
 0x14f   :  { %650 = vst [vmem:[#allocation11 + $0x70] sm:$0xff] %v815_v10  ;;  %v895_v14 = vpack.c.bf16 %v265_v11, %v261_v9  ;;  %v816_v38 = vpack.c.bf16 %v378_v12, %v376_v6 }
 0x150   :  { %903 = vst [vmem:[#allocation8 + $0x38] sm:$0xff] %v855_v13  }
 0x151   :  { %910 = vst [vmem:[#allocation9 + $0x38] sm:$0xff] %v895_v14   ;;  %651 = vst [vmem:[#allocation11 + $0x78] sm:$0xff] %v816_v38 }
 0x152   :  { %1007 = shalt.err (!%p1004_p0)
}
 0x153   :  { %s1008_s14 = scalar_lea.hbm %s1296_s3, 1024 }
 0x154   :  { %p1009_p1 = scmp.ne.s32.totalorder %s1296_s3, %s1008_s14  ;;  %p1012_p2 = scmp.lt.u32.totalorder %s1008_s14, %s1296_s3 }
 0x156   :  { %p1014_p3 = pnand %p1012_p2, %p1009_p1 }
 0x158   :  { %1017 = shalt.err (!%p1014_p3)
}
 0x159   :  { %s1081_s20 = smov 64   ;;  %s1082_s21 = smov 4  }
 0x15a   :  { %663 = dma.vmem_to_hbm [thread:$0]  %s658_s6, 1024, %s1296_s3, [#allocation4], %s1081_s20, %s1081_s20, %s1082_s21  }
 0x15b   :  { %s1018_s24 = scalar_lea.vmem %s1240_s8, 1024  ;;  %p1023_p5 = scmp.lt.s32.totalorder %s1240_s8, %s1240_s8 }
 0x15c   :  { %p1019_p4 = scmp.ne.s32.totalorder %s1240_s8, %s1018_s24  ;;  %p1024_p6 = scmp.lt.s32.totalorder %s1018_s24, %s1018_s24 }
 0x15e   :  { %p1025_p7 = por %p1024_p6, %p1023_p5 }
 0x160   :  { %p1026_p8 = pnand %p1025_p7, %p1019_p4 }
 0x162   :  { %1029 = shalt.err (!%p1026_p8)
}
 0x163   :  { %s1030_s27 = scalar_lea.hbm %s1297_s4, 1024 }
 0x164   :  { %p1031_p9 = scmp.ne.s32.totalorder %s1297_s4, %s1030_s27  ;;  %p1034_p10 = scmp.lt.u32.totalorder %s1030_s27, %s1297_s4 }
 0x166   :  { %p1036_p11 = pnand %p1034_p10, %p1031_p9 }
 0x168   :  { %1039 = shalt.err (!%p1036_p11)
}
 0x169   :  { %675 = dma.vmem_to_hbm [thread:$0]  %s1240_s8, 1024, %s1297_s4, [#allocation10], %s1081_s20, %s1081_s20, %s1082_s21  }
 0x16a   :  { %s1040_s6 = scalar_lea.vmem %s1242_s10, 2048  ;;  %p1045_p13 = scmp.lt.s32.totalorder %s1242_s10, %s1242_s10 }
 0x16b   :  { %p1041_p12 = scmp.ne.s32.totalorder %s1242_s10, %s1040_s6  ;;  %p1046_p0 = scmp.lt.s32.totalorder %s1040_s6, %s1040_s6 }
 0x16d   :  { %p1047_p1 = por %p1046_p0, %p1045_p13 }
 0x16f   :  { %p1048_p2 = pnand %p1047_p1, %p1041_p12 }
 0x171   :  { %1051 = shalt.err (!%p1048_p2)
}
 0x172   :  { %s1052_s11 = scalar_lea.hbm %s1298_s5, 2048 }
 0x173   :  { %p1053_p3 = scmp.ne.s32.totalorder %s1298_s5, %s1052_s11  ;;  %p1056_p4 = scmp.lt.u32.totalorder %s1052_s11, %s1298_s5 }
 0x175   :  { %p1058_p5 = pnand %p1056_p4, %p1053_p3 }
 0x177   :  { %1061 = shalt.err (!%p1058_p5)
}
 0x178   :  { %687 = dma.vmem_to_hbm [thread:$0]  %s1242_s10, 2048, %s1298_s5, [#allocation10], %s1074_s1, %s1074_s1, %s1075_s17  }
 0x179   :  { %1066 = dma.done.wait [#allocation4], 1024  }
 0x17a   :  { %1067 = vsyncadd [#allocation4], 4294966272 }
 0x17b   :  { %1068 = dma.done.wait [#allocation10], 3072  }
 0x17c   :  { %1069 = vsyncadd [#allocation10], 4294964224 }
 0x17d   :  { %697 = vsyncpa [#allocation3], 1 }
 0x17e   :  { %698 = vsyncpa [#allocation6], 1 }
 0x17f   :  { %699 = vsyncpa [#allocation4], 1 }
 0x180   :  { %700 = vsyncpa [#allocation10], 1 }

</bundles_post_ra>
